<compile_context>
chip_gen: v7x
topology: tpu7x:2x2x1
jax: 0.10.0
libtpu: 0.0.40
codegen_flags: <defaults>
</compile_context>

<pallas_src>
import functools

import jax
import jax.numpy as jnp
from jax.experimental import pallas as pl
from jax.experimental.pallas import tpu as pltpu

_LANE = 128
_SUBLANE = 8


def _round_up(n, m):
    return ((n + m - 1) // m) * m


def _pad_to(a, shape):
    pads = [(0, s - d) for d, s in zip(a.shape, shape)]
    if all(p == (0, 0) for p in pads):
        return a
    return jnp.pad(a, pads)


def _mlp_kernel(x_ref, we_ref, be_ref, wh_ref, bh_ref, wu_ref, bu_ref, o_ref,
                *, n_mlp_layers, eps, inv_d_model, compute_dtype):
    tile_m = x_ref.shape[0]

    x = x_ref[...].astype(jnp.float32)
    # RMSNorm (elementwise_affine=False) over the TRUE feature width: padded
    # lanes are zero so sum(x^2) is unaffected; divide by the unpadded d_model.
    ss = jnp.sum(x * x, axis=-1, keepdims=True)
    normed = x * jax.lax.rsqrt(ss * inv_d_model + eps)

    # Hoisted bias broadcasts (reused every hidden iteration).
    be = jnp.broadcast_to(be_ref[...], (tile_m, be_ref.shape[1]))
    bh = jnp.broadcast_to(bh_ref[...], (tile_m, bh_ref.shape[1]))
    bu = jnp.broadcast_to(bu_ref[...], (tile_m, bu_ref.shape[1]))

    we = we_ref[...]   # already in compute_dtype (cast in the wrapper)
    wh = wh_ref[...]
    wu = wu_ref[...]

    # embed + ReLU (MXU operands in compute_dtype, f32 accumulation).
    h = jnp.dot(normed.astype(compute_dtype), we,
                preferred_element_type=jnp.float32) + be
    h = jnp.maximum(h, 0.0)

    # hidden: the SAME Linear applied n_mlp_layers times, then one (idempotent)
    # ReLU — matching Sequential(Linear*n, ReLU*n) from the comprehension.
    for _ in range(n_mlp_layers):
        h = jnp.dot(h.astype(compute_dtype), wh,
                    preferred_element_type=jnp.float32) + bh
    h = jnp.maximum(h, 0.0)

    # unembed
    out = jnp.dot(h.astype(compute_dtype), wu,
                  preferred_element_type=jnp.float32) + bu
    o_ref[...] = out.astype(o_ref.dtype)


def mlp_pallas(x, params, n_mlp_layers, *, tile_m=256,
               compute_dtype=jnp.float32):
    """x: (N, d_model) float32. params: (in, out)-layout weights, (1, out) biases."""
    N, d_model = x.shape
    d_mlp = params["w_embed"].shape[1]
    eps = float(jnp.finfo(x.dtype).eps)  # matches nn.RMSNorm(eps=None)

    # Lane-dense feature dims.
    dm_p = _round_up(d_model, _LANE)
    dh_p = _round_up(d_mlp, _LANE)

    # Row tiling: pad N up to a multiple of the effective row tile.
    tile_m_eff = min(_round_up(tile_m, _SUBLANE), _round_up(N, _SUBLANE))
    n_p = _round_up(N, tile_m_eff)

    x_p = _pad_to(x, (n_p, dm_p))
    we = _pad_to(params["w_embed"], (dm_p, dh_p)).astype(compute_dtype)
    wh = _pad_to(params["w_hidden"], (dh_p, dh_p)).astype(compute_dtype)
    wu = _pad_to(params["w_unembed"], (dh_p, dm_p)).astype(compute_dtype)
    be = _pad_to(params["b_embed"], (1, dh_p)).astype(jnp.float32)
    bh = _pad_to(params["b_hidden"], (1, dh_p)).astype(jnp.float32)
    bu = _pad_to(params["b_unembed"], (1, dm_p)).astype(jnp.float32)

    kernel = functools.partial(
        _mlp_kernel, n_mlp_layers=n_mlp_layers, eps=eps,
        inv_d_model=1.0 / d_model, compute_dtype=compute_dtype)

    const = lambda i: (0, 0)  # weights/biases: same block for every row tile

    # Scheduling hint for XLA around the custom call.
    flops = 2 * n_p * (2 * dm_p * dh_p + n_mlp_layers * dh_p * dh_p)
    w_bytes = int((we.size + wh.size + wu.size) * jnp.dtype(compute_dtype).itemsize)
    b_bytes = int((be.size + bh.size + bu.size) * 4)
    bytes_accessed = int((x_p.size + n_p * dm_p) * 4 + w_bytes + b_bytes)
    cost = pl.CostEstimate(flops=int(flops), transcendentals=int(n_p),
                           bytes_accessed=bytes_accessed)

    # Explicit VMEM budget: double-buffered x/out tiles + (double-buffered)
    # resident weights + per-step intermediates, with generous margin.
    act_bytes = tile_m_eff * dm_p * 4
    inter_bytes = tile_m_eff * dh_p * 4
    vmem_est = 2 * 2 * act_bytes + 2 * (w_bytes + b_bytes) + 4 * inter_bytes
    vmem_limit_bytes = int(min(100 * 2**20, max(16 * 2**20, 2 * vmem_est)))

    out_p = pl.pallas_call(
        kernel,
        out_shape=jax.ShapeDtypeStruct((n_p, dm_p), x.dtype),
        grid_spec=pltpu.PrefetchScalarGridSpec(
            num_scalar_prefetch=0,
            grid=(n_p // tile_m_eff,),
            in_specs=[
                pl.BlockSpec((tile_m_eff, dm_p), lambda i: (i, 0)),  # x rows
                pl.BlockSpec((dm_p, dh_p), const),                   # W_embed
                pl.BlockSpec((1, dh_p), const),                      # b_embed
                pl.BlockSpec((dh_p, dh_p), const),                   # W_hidden
                pl.BlockSpec((1, dh_p), const),                      # b_hidden
                pl.BlockSpec((dh_p, dm_p), const),                   # W_unembed
                pl.BlockSpec((1, dm_p), const),                      # b_unembed
            ],
            out_specs=pl.BlockSpec((tile_m_eff, dm_p), lambda i: (i, 0)),
        ),
        compiler_params=pltpu.CompilerParams(
            dimension_semantics=("parallel",),
            vmem_limit_bytes=vmem_limit_bytes,
        ),
        cost_estimate=cost,
    )(x_p, we, be, wh, bh, wu, bu)

    return out_p[:N, :d_model]


def mlp_reference(x, params, n_mlp_layers, compute_dtype=jnp.float32):
    eps = jnp.finfo(x.dtype).eps
    ms = jnp.mean(x * x, axis=-1, keepdims=True)
    normed = x * jax.lax.rsqrt(ms + eps)
    cd = compute_dtype
    we = params["w_embed"].astype(cd)
    wh = params["w_hidden"].astype(cd)
    wu = params["w_unembed"].astype(cd)
    h = jnp.dot(normed.astype(cd), we, preferred_element_type=jnp.float32) + params["b_embed"]
    h = jnp.maximum(h, 0.0)
    for _ in range(n_mlp_layers):
        h = jnp.dot(h.astype(cd), wh, preferred_element_type=jnp.float32) + params["b_hidden"]
    h = jnp.maximum(h, 0.0)
    return jnp.dot(h.astype(cd), wu, preferred_element_type=jnp.float32) + params["b_unembed"]


if __name__ == "__main__":
    # Small shapes consistent with the module's forward: x is (batch, seq, d_model).
    batch, seq, d_model, d_mlp, n_mlp_layers = 2, 8, 32, 64, 2

    key = jax.random.PRNGKey(0)
    kx, k1, k2, k3, k4, k5, k6 = jax.random.split(key, 7)

    x = jax.random.normal(kx, (batch, seq, d_model), dtype=jnp.float32)

    # Deterministic synthetic parameters; (in, out) layout, biases as (1, out).
    params = {
        "w_embed":   jax.random.normal(k1, (d_model, d_mlp), jnp.float32) * (1.0 / d_model ** 0.5),
        "b_embed":   jax.random.normal(k2, (1, d_mlp), jnp.float32) * 0.01,
        "w_hidden":  jax.random.normal(k3, (d_mlp, d_mlp), jnp.float32) * (1.0 / d_mlp ** 0.5),
        "b_hidden":  jax.random.normal(k4, (1, d_mlp), jnp.float32) * 0.01,
        "w_unembed": jax.random.normal(k5, (d_mlp, d_model), jnp.float32) * (1.0 / d_mlp ** 0.5),
        "b_unembed": jax.random.normal(k6, (1, d_model), jnp.float32) * 0.01,
    }

    x_flat = x.reshape(batch * seq, d_model)

    # f32 path (default): tight check against the reference.
    out_f32 = mlp_pallas(x_flat, params, n_mlp_layers, tile_m=256,
                         compute_dtype=jnp.float32)
    jax.block_until_ready(out_f32)
    ref_f32 = mlp_reference(x_flat, params, n_mlp_layers, compute_dtype=jnp.float32)
    assert jnp.allclose(out_f32, ref_f32, atol=1e-4, rtol=1e-4), "f32 mismatch vs. reference"

    # bf16 MXU-operand path (f32 accumulation): check against a matching-cast reference.
    out_bf16 = mlp_pallas(x_flat, params, n_mlp_layers, tile_m=256,
                          compute_dtype=jnp.bfloat16)
    jax.block_until_ready(out_bf16)
    ref_bf16 = mlp_reference(x_flat, params, n_mlp_layers, compute_dtype=jnp.bfloat16)
    assert jnp.allclose(out_bf16, ref_bf16, atol=2e-2, rtol=2e-2), "bf16 mismatch vs. reference"

    print("KERNEL_OK")
</pallas_src>

<mosaic_0001>
module attributes {stable_mosaic.version = 11 : i64} {
  func.func @_mlp_kernel(%arg0: i32, %arg1: memref<16x128xf32, #tpu.memory_space<vmem>>, %arg2: memref<128x128xf32, #tpu.memory_space<vmem>>, %arg3: memref<1x128xf32, #tpu.memory_space<vmem>>, %arg4: memref<128x128xf32, #tpu.memory_space<vmem>>, %arg5: memref<1x128xf32, #tpu.memory_space<vmem>>, %arg6: memref<128x128xf32, #tpu.memory_space<vmem>>, %arg7: memref<1x128xf32, #tpu.memory_space<vmem>>, %arg8: memref<16x128xf32, #tpu.memory_space<vmem>>) attributes {dimension_semantics = [#tpu.dimension_semantics<parallel>], iteration_bounds = array<i64: 1>, scalar_prefetch = 0 : i64, scratch_operands = 0 : i64, tpu.core_type = #tpu.core_type<tc>, window_params = [{transform_indices = @transform_0, window_bounds = array<i64: 16, 128>}, {pipeline_mode = #tpu.pipeline_mode<synchronous>, transform_indices = @transform_1, window_bounds = array<i64: 128, 128>}, {pipeline_mode = #tpu.pipeline_mode<synchronous>, transform_indices = @transform_2, window_bounds = array<i64: 1, 128>}, {pipeline_mode = #tpu.pipeline_mode<synchronous>, transform_indices = @transform_3, window_bounds = array<i64: 128, 128>}, {pipeline_mode = #tpu.pipeline_mode<synchronous>, transform_indices = @transform_4, window_bounds = array<i64: 1, 128>}, {pipeline_mode = #tpu.pipeline_mode<synchronous>, transform_indices = @transform_5, window_bounds = array<i64: 128, 128>}, {pipeline_mode = #tpu.pipeline_mode<synchronous>, transform_indices = @transform_6, window_bounds = array<i64: 1, 128>}, {transform_indices = @transform_7, window_bounds = array<i64: 16, 128>}]} {
    %c0 = arith.constant 0 : index
    %c0_0 = arith.constant 0 : index
    %0 = vector.load %arg1[%c0, %c0_0] : memref<16x128xf32, #tpu.memory_space<vmem>>, vector<16x128xf32>
    %1 = arith.mulf %0, %0 : vector<16x128xf32>
    %cst = arith.constant dense<0.000000e+00> : vector<16xf32>
    %2 = vector.multi_reduction <add>, %1, %cst [1] : vector<16x128xf32> to vector<16xf32>
    %3 = vector.shape_cast %2 : vector<16xf32> to vector<16x1xf32>
    %cst_1 = arith.constant 3.125000e-02 : f32
    %4 = vector.broadcast %cst_1 : f32 to vector<16x1xf32>
    %5 = arith.mulf %3, %4 : vector<16x1xf32>
    %cst_2 = arith.constant 1.1920929E-7 : f32
    %6 = vector.broadcast %cst_2 : f32 to vector<16x1xf32>
    %7 = arith.addf %5, %6 : vector<16x1xf32>
    %8 = math.rsqrt %7 : vector<16x1xf32>
    %9 = vector.broadcast %8 : vector<16x1xf32> to vector<16x128xf32>
    %10 = arith.mulf %0, %9 : vector<16x128xf32>
    %c0_3 = arith.constant 0 : index
    %c0_4 = arith.constant 0 : index
    %11 = vector.load %arg3[%c0_3, %c0_4] : memref<1x128xf32, #tpu.memory_space<vmem>>, vector<1x128xf32>
    %12 = vector.shape_cast %11 : vector<1x128xf32> to vector<1x128xf32>
    %13 = vector.broadcast %12 : vector<1x128xf32> to vector<16x128xf32>
    %c0_5 = arith.constant 0 : index
    %c0_6 = arith.constant 0 : index
    %14 = vector.load %arg5[%c0_5, %c0_6] : memref<1x128xf32, #tpu.memory_space<vmem>>, vector<1x128xf32>
    %15 = vector.shape_cast %14 : vector<1x128xf32> to vector<1x128xf32>
    %16 = vector.broadcast %15 : vector<1x128xf32> to vector<16x128xf32>
    %c0_7 = arith.constant 0 : index
    %c0_8 = arith.constant 0 : index
    %17 = vector.load %arg7[%c0_7, %c0_8] : memref<1x128xf32, #tpu.memory_space<vmem>>, vector<1x128xf32>
    %18 = vector.shape_cast %17 : vector<1x128xf32> to vector<1x128xf32>
    %19 = vector.broadcast %18 : vector<1x128xf32> to vector<16x128xf32>
    %c0_9 = arith.constant 0 : index
    %c0_10 = arith.constant 0 : index
    %20 = vector.load %arg2[%c0_9, %c0_10] : memref<128x128xf32, #tpu.memory_space<vmem>>, vector<128x128xf32>
    %c0_11 = arith.constant 0 : index
    %c0_12 = arith.constant 0 : index
    %21 = vector.load %arg4[%c0_11, %c0_12] : memref<128x128xf32, #tpu.memory_space<vmem>>, vector<128x128xf32>
    %c0_13 = arith.constant 0 : index
    %c0_14 = arith.constant 0 : index
    %22 = vector.load %arg6[%c0_13, %c0_14] : memref<128x128xf32, #tpu.memory_space<vmem>>, vector<128x128xf32>
    %cst_15 = arith.constant dense<0.000000e+00> : vector<16x128xf32>
    %23 = tpu.matmul %10, %20, %cst_15 {dimension_numbers = #tpu.dot_dimension_numbers<[1], [0], [0], [1], [0, 0, 1, 1], [], []>} : vector<16x128xf32>, vector<128x128xf32>, vector<16x128xf32> -> vector<16x128xf32>
    %24 = arith.addf %23, %13 : vector<16x128xf32>
    %cst_16 = arith.constant 0.000000e+00 : f32
    %25 = vector.broadcast %cst_16 : f32 to vector<16x128xf32>
    %26 = arith.maximumf %24, %25 : vector<16x128xf32>
    %cst_17 = arith.constant dense<0.000000e+00> : vector<16x128xf32>
    %27 = tpu.matmul %26, %21, %cst_17 {dimension_numbers = #tpu.dot_dimension_numbers<[1], [0], [0], [1], [0, 0, 1, 1], [], []>} : vector<16x128xf32>, vector<128x128xf32>, vector<16x128xf32> -> vector<16x128xf32>
    %28 = arith.addf %27, %16 : vector<16x128xf32>
    %cst_18 = arith.constant dense<0.000000e+00> : vector<16x128xf32>
    %29 = tpu.matmul %28, %21, %cst_18 {dimension_numbers = #tpu.dot_dimension_numbers<[1], [0], [0], [1], [0, 0, 1, 1], [], []>} : vector<16x128xf32>, vector<128x128xf32>, vector<16x128xf32> -> vector<16x128xf32>
    %30 = arith.addf %29, %16 : vector<16x128xf32>
    %cst_19 = arith.constant 0.000000e+00 : f32
    %31 = vector.broadcast %cst_19 : f32 to vector<16x128xf32>
    %32 = arith.maximumf %30, %31 : vector<16x128xf32>
    %cst_20 = arith.constant dense<0.000000e+00> : vector<16x128xf32>
    %33 = tpu.matmul %32, %22, %cst_20 {dimension_numbers = #tpu.dot_dimension_numbers<[1], [0], [0], [1], [0, 0, 1, 1], [], []>} : vector<16x128xf32>, vector<128x128xf32>, vector<16x128xf32> -> vector<16x128xf32>
    %34 = arith.addf %33, %19 : vector<16x128xf32>
    %c0_21 = arith.constant 0 : index
    %c0_22 = arith.constant 0 : index
    %35 = vector.load %arg8[%c0_21, %c0_22] : memref<16x128xf32, #tpu.memory_space<vmem>>, vector<16x128xf32>
    tpu.vector_store %arg8[%c0_21, %c0_22], %34 {strides = array<i32>} : memref<16x128xf32, #tpu.memory_space<vmem>>, vector<16x128xf32>,
    return
  }
  func.func @transform_0(%arg0: i32) -> (i32, i32) {
    %c0_i32 = arith.constant 0 : i32
    %c0_i32_0 = arith.constant 0 : i32
    return %arg0, %c0_i32 : i32, i32
  }
  func.func @transform_1(%arg0: i32) -> (i32, i32) {
    %c0_i32 = arith.constant 0 : i32
    %c0_i32_0 = arith.constant 0 : i32
    %c0_i32_1 = arith.constant 0 : i32
    return %c0_i32, %c0_i32_0 : i32, i32
  }
  func.func @transform_2(%arg0: i32) -> (i32, i32) {
    %c0_i32 = arith.constant 0 : i32
    %c0_i32_0 = arith.constant 0 : i32
    %c0_i32_1 = arith.constant 0 : i32
    return %c0_i32, %c0_i32_0 : i32, i32
  }
  func.func @transform_3(%arg0: i32) -> (i32, i32) {
    %c0_i32 = arith.constant 0 : i32
    %c0_i32_0 = arith.constant 0 : i32
    %c0_i32_1 = arith.constant 0 : i32
    return %c0_i32, %c0_i32_0 : i32, i32
  }
  func.func @transform_4(%arg0: i32) -> (i32, i32) {
    %c0_i32 = arith.constant 0 : i32
    %c0_i32_0 = arith.constant 0 : i32
    %c0_i32_1 = arith.constant 0 : i32
    return %c0_i32, %c0_i32_0 : i32, i32
  }
  func.func @transform_5(%arg0: i32) -> (i32, i32) {
    %c0_i32 = arith.constant 0 : i32
    %c0_i32_0 = arith.constant 0 : i32
    %c0_i32_1 = arith.constant 0 : i32
    return %c0_i32, %c0_i32_0 : i32, i32
  }
  func.func @transform_6(%arg0: i32) -> (i32, i32) {
    %c0_i32 = arith.constant 0 : i32
    %c0_i32_0 = arith.constant 0 : i32
    %c0_i32_1 = arith.constant 0 : i32
    return %c0_i32, %c0_i32_0 : i32, i32
  }
  func.func @transform_7(%arg0: i32) -> (i32, i32) {
    %c0_i32 = arith.constant 0 : i32
    %c0_i32_0 = arith.constant 0 : i32
    return %arg0, %c0_i32 : i32, i32
  }
}

</mosaic_0001>

<bundles_post_ra>
// kernel: tpu_custom_call.1
= control target key start
LH: loop header
LB: loop body
LE: loop exit
PB: predicated region body
PF: predicated region fallthrough
CT: control target
= control target key end

     0   :  { %12 = vsyncpa [#allocation3], 0  ;;  %s1119_s0 = inlined_call_operand.hbm [shape: f32[16,128], index: 0, kind: input, shape index: {}]   ;;  %s1120_s1 = inlined_call_operand.hbm [shape: f32[128,128], index: 1, kind: input, shape index: {}]   ;;  %s1121_s2 = inlined_call_operand.vmem [shape: f32[1,128], index: 2, kind: input, shape index: {}]   ;;  %s1122_s3 = inlined_call_operand.hbm [shape: f32[128,128], index: 3, kind: input, shape index: {}]   ;;  %s1123_s4 = inlined_call_operand.vmem [shape: f32[1,128], index: 4, kind: input, shape index: {}]   ;;  %s1124_s5 = inlined_call_operand.hbm [shape: f32[128,128], index: 5, kind: input, shape index: {}]   ;;  %s1125_s6 = inlined_call_operand.vmem [shape: f32[1,128], index: 6, kind: input, shape index: {}]   ;;  %s1126_s7 = inlined_call_operand.hbm [shape: f32[16,128], index: 7, kind: output, shape index: {}]  }
   0x1   :  { %13 = vsyncpa [#allocation6], 0 }
   0x2   :  { %14 = vsyncpa [#allocation9], 0 }
   0x3   :  { %15 = vsyncpa [#allocation4], 0  ;;  %s964_s24 = smov [#allocation5]   ;;  %s965_s26 = smov [#allocation2]  }
   0x4   :  { %s33_s25 = sshll.u32 %s964_s24, 4  ;;  %s21_s27 = sshll.u32 %s965_s26, 4  ;;  %s34_s25 = int_to_ptr.vmem [resolvable:$true] %s33_s25  ;;  %s1011_s27 = int_to_ptr.vmem [resolvable:$true] %s21_s27 }
   0x5   :  { %s846_s30 = scalar_lea.hbm %s1120_s1, 2048 }
   0x6   :  { %p847_p0 = scmp.ne.s32.totalorder %s1120_s1, %s846_s30  ;;  %p850_p1 = scmp.lt.u32.totalorder %s846_s30, %s1120_s1 }
   0x8   :  { %p852_p2 = pnand %p850_p1, %p847_p0 }
   0xa   :  { %855 = shalt.err (!%p852_p2)
}
   0xb   :  { %s856_s12 = scalar_lea.vmem %s34_s25, 2048  ;;  %p861_p4 = scmp.lt.s32.totalorder %s34_s25, %s34_s25 }
   0xc   :  { %p857_p3 = scmp.ne.s32.totalorder %s34_s25, %s856_s12  ;;  %p862_p5 = scmp.lt.s32.totalorder %s856_s12, %s856_s12 }
   0xe   :  { %p863_p6 = por %p862_p5, %p861_p4 }
  0x10   :  { %p864_p7 = pnand %p863_p6, %p857_p3 }
  0x12   :  { %867 = shalt.err (!%p864_p7)
}
  0x13   :  { %s966_s13 = smov 128   ;;  %s967_s14 = smov 8  }
  0x14   :  { %39 = dma.hbm_to_vmem [thread:$0]  %s1120_s1, 2048, %s34_s25, [#allocation6], %s966_s13, %s966_s13, %s967_s14  }
  0x15   :  { %s868_s19 = scalar_lea.hbm %s1119_s0, 256 }
  0x16   :  { %p869_p8 = scmp.ne.s32.totalorder %s1119_s0, %s868_s19  ;;  %p872_p9 = scmp.lt.u32.totalorder %s868_s19, %s1119_s0 }
  0x18   :  { %p874_p10 = pnand %p872_p9, %p869_p8 }
  0x1a   :  { %877 = shalt.err (!%p874_p10)
}
  0x1b   :  { %s878_s24 = scalar_lea.vmem %s1011_s27, 256  ;;  %p883_p12 = scmp.lt.s32.totalorder %s1011_s27, %s1011_s27 }
  0x1c   :  { %p879_p11 = scmp.ne.s32.totalorder %s1011_s27, %s878_s24  ;;  %p884_p13 = scmp.lt.s32.totalorder %s878_s24, %s878_s24 }
  0x1e   :  { %p885_p0 = por %p884_p13, %p883_p12 }
  0x20   :  { %p886_p1 = pnand %p885_p0, %p879_p11 }
  0x22   :  { %889 = shalt.err (!%p886_p1)
}
  0x23   :  { %27 = dma.hbm_to_vmem [thread:$0]  %s1119_s0, 256, %s1011_s27, [#allocation3], %s966_s13, %s966_s13, %s967_s14  }
  0x24   :  { %s968_s26 = smov [#allocation7]   ;;  %s969_s29 = smov [#allocation8]  }
  0x25   :  { %s47_s28 = sshll.u32 %s968_s26, 4  ;;  %s61_s30 = sshll.u32 %s969_s29, 4  ;;  %s48_s28 = int_to_ptr.vmem [resolvable:$true] %s47_s28  ;;  %s1048_s30 = int_to_ptr.vmem [resolvable:$true] %s61_s30 }
  0x26   :  { %s890_s10 = scalar_lea.hbm %s1122_s3, 2048 }
  0x27   :  { %p891_p2 = scmp.ne.s32.totalorder %s1122_s3, %s890_s10  ;;  %p894_p3 = scmp.lt.u32.totalorder %s890_s10, %s1122_s3 }
  0x29   :  { %p896_p4 = pnand %p894_p3, %p891_p2 }
  0x2b   :  { %899 = shalt.err (!%p896_p4)
}
  0x2c   :  { %s900_s0 = scalar_lea.vmem %s48_s28, 2048  ;;  %p905_p6 = scmp.lt.s32.totalorder %s48_s28, %s48_s28 }
  0x2d   :  { %p901_p5 = scmp.ne.s32.totalorder %s48_s28, %s900_s0  ;;  %p906_p7 = scmp.lt.s32.totalorder %s900_s0, %s900_s0 }
  0x2f   :  { %p907_p8 = por %p906_p7, %p905_p6 }
  0x31   :  { %p908_p9 = pnand %p907_p8, %p901_p5 }
  0x33   :  { %911 = shalt.err (!%p908_p9)
}
  0x34   :  { %53 = dma.hbm_to_vmem [thread:$0]  %s1122_s3, 2048, %s48_s28, [#allocation6], %s966_s13, %s966_s13, %s967_s14  }
  0x35   :  { %s912_s20 = scalar_lea.hbm %s1124_s5, 2048 }
  0x36   :  { %p913_p10 = scmp.ne.s32.totalorder %s1124_s5, %s912_s20  ;;  %p916_p11 = scmp.lt.u32.totalorder %s912_s20, %s1124_s5 }
  0x38   :  { %p918_p12 = pnand %p916_p11, %p913_p10 }
  0x3a   :  { %921 = shalt.err (!%p918_p12)
}
  0x3b   :  { %s922_s1 = scalar_lea.vmem %s1048_s30, 2048  ;;  %p927_p0 = scmp.lt.s32.totalorder %s1048_s30, %s1048_s30 }
  0x3c   :  { %p923_p13 = scmp.ne.s32.totalorder %s1048_s30, %s922_s1  ;;  %p928_p1 = scmp.lt.s32.totalorder %s922_s1, %s922_s1 }
  0x3e   :  { %p929_p2 = por %p928_p1, %p927_p0 }
  0x40   :  { %p930_p3 = pnand %p929_p2, %p923_p13 }
  0x42   :  { %933 = shalt.err (!%p930_p3)
}
  0x43   :  { %67 = dma.hbm_to_vmem [thread:$0]  %s1124_s5, 2048, %s1048_s30, [#allocation9], %s966_s13, %s966_s13, %s967_s14  }
  0x44   :  { %956 = dma.done.wait [#allocation3], 256  }
  0x45   :  { %957 = vsyncadd [#allocation3], 4294967040 }
  0x46   :  { %958 = dma.done.wait [#allocation6], 4096  }
  0x47   :  { %959 = vsyncadd [#allocation6], 4294963200 }
  0x48   :  { %960 = dma.done.wait [#allocation9], 2048  }
  0x49   :  { %961 = vsyncadd [#allocation9], 4294965248  ;;  %v1085_v0 = vld [vmem:[#allocation2] sm:$0xff]  ;;  %v1087_v1 = vld [vmem:[#allocation2 + $0x8] sm:$0xff]  ;;  %s970_s30 = smov [#allocation10]  }
  0x4a   :  { %v119_v2 = vld [vmem:[#allocation5] sm:$0xff]  ;;  %v84_v3 = vmul.f32 %v1085_v0, %v1085_v0  ;;  %v120_v4 = vld [vmem:[#allocation5 + $0x8] sm:$0xff]  ;;  %v121_v5 = vld [vmem:[#allocation5 + $0x10] sm:$0xff]  ;;  %v85_v9 = vmul.f32 %v1087_v1, %v1087_v1  ;;  %s478_s8 = sshll.u32 %s970_s30, 4  ;;  %s479_s8 = int_to_ptr.vmem [resolvable:$true] %s478_s8 }
  0x4b   :  { %v122_v6 = vld [vmem:[#allocation5 + $0x18] sm:$0xff]  ;;  %v707_v7 = vpack.c.bf16 %v120_v4, %v119_v2  ;;  %v123_v10 = vld [vmem:[#allocation5 + $0x20] sm:$0xff]  ;;  %v124_v11 = vld [vmem:[#allocation5 + $0x28] sm:$0xff]  ;;  %s934_s9 = scalar_lea.vmem %s479_s8, 256  ;;  %p939_p5 = scmp.lt.s32.totalorder %s479_s8, %s479_s8 }
  0x4c   :  { %v711_v8 = vpack.c.bf16 %v122_v6, %v121_v5  ;;  %86 = vadd.xlane.f32.xlu0 %v84_v3  ;;  %v715_v12 = vpack.c.bf16 %v124_v11, %v123_v10  ;;  %v125_v13 = vld [vmem:[#allocation5 + $0x30] sm:$0xff]  ;;  %v126_v14 = vld [vmem:[#allocation5 + $0x38] sm:$0xff]  ;;  %v127_v16 = vld [vmem:[#allocation5 + $0x40] sm:$0xff]  ;;  %p935_p4 = scmp.ne.s32.totalorder %s479_s8, %s934_s9  ;;  %p940_p6 = scmp.lt.s32.totalorder %s934_s9, %s934_s9 }
  0x4d   :  { %708 = vmatprep.subr.bf16.mxu0 %v707_v7  ;;  %v719_v15 = vpack.c.bf16 %v126_v14, %v125_v13  ;;  %v128_v17 = vld [vmem:[#allocation5 + $0x48] sm:$0xff]  ;;  %v129_v19 = vld [vmem:[#allocation5 + $0x50] sm:$0xff]  ;;  %v130_v20 = vld [vmem:[#allocation5 + $0x58] sm:$0xff] }
  0x4e   :  { %710 = vmatpush3.bf16.msra.mxu0 %v707_v7  ;;  %v723_v18 = vpack.c.bf16 %v128_v17, %v127_v16  ;;  %v727_v21 = vpack.c.bf16 %v130_v20, %v129_v19  ;;  %v131_v22 = vld [vmem:[#allocation5 + $0x60] sm:$0xff]  ;;  %v132_v23 = vld [vmem:[#allocation5 + $0x68] sm:$0xff]  ;;  %v133_v24 = vld [vmem:[#allocation5 + $0x70] sm:$0xff]  ;;  %p941_p7 = por %p940_p6, %p939_p5 }
  0x4f   :  { %712 = vmatprep.subr.bf16.mxu0 %v711_v8  ;;  %v731_v25 = vpack.c.bf16 %v132_v23, %v131_v22  ;;  %v134_v26 = vld [vmem:[#allocation5 + $0x78] sm:$0xff]  ;;  %v135_v28 = vld [vmem:[#allocation7] sm:$0xff]  ;;  %v136_v29 = vld [vmem:[#allocation7 + $0x8] sm:$0xff] }
  0x50   :  { %88 = vadd.xlane.f32.xlu0 %v85_v9  ;;  %v735_v27 = vpack.c.bf16 %v134_v26, %v133_v24  ;;  %v137_v30 = vld [vmem:[#allocation7 + $0x10] sm:$0xff]  ;;  %v739_v31 = vpack.c.bf16 %v136_v29, %v135_v28  ;;  %v138_v32 = vld [vmem:[#allocation7 + $0x18] sm:$0xff]  ;;  %v139_v34 = vld [vmem:[#allocation7 + $0x20] sm:$0xff]  ;;  %p942_p8 = pnand %p941_p7, %p935_p4 }
  0x51   :  { %v743_v33 = vpack.c.bf16 %v138_v32, %v137_v30  ;;  %v140_v35 = vld [vmem:[#allocation7 + $0x28] sm:$0xff]  ;;  %v141_v37 = vld [vmem:[#allocation7 + $0x30] sm:$0xff]  ;;  %v142_v38 = vld [vmem:[#allocation7 + $0x38] sm:$0xff] }
  0x52   :  { %714 = vmatpush3.bf16.msra.mxu0 %v711_v8  ;;  %740 = vmatprep.subr.bf16.mxu1 %v739_v31  ;;  %v747_v36 = vpack.c.bf16 %v140_v35, %v139_v34  ;;  %v751_v39 = vpack.c.bf16 %v142_v38, %v141_v37  ;;  %v143_v40 = vld [vmem:[#allocation7 + $0x40] sm:$0xff]  ;;  %v144_v41 = vld [vmem:[#allocation7 + $0x48] sm:$0xff]  ;;  %v145_v43 = vld [vmem:[#allocation7 + $0x50] sm:$0xff] }
  0x53   :  { %716 = vmatprep.subr.bf16.mxu0 %v715_v12  ;;  %742 = vmatpush3.bf16.msra.mxu1 %v739_v31  ;;  %v755_v42 = vpack.c.bf16 %v144_v41, %v143_v40  ;;  %v146_v44 = vld [vmem:[#allocation7 + $0x58] sm:$0xff]  ;;  %v147_v46 = vld [vmem:[#allocation7 + $0x60] sm:$0xff]  ;;  %v148_v47 = vld [vmem:[#allocation7 + $0x68] sm:$0xff] }
  0x54   :  { %744 = vmatprep.subr.bf16.mxu1 %v743_v33  ;;  %v759_v45 = vpack.c.bf16 %v146_v44, %v145_v43  ;;  %v763_v48 = vpack.c.bf16 %v148_v47, %v147_v46  ;;  %v149_v59 = vld [vmem:[#allocation7 + $0x70] sm:$0xff]  ;;  %v150_v60 = vld [vmem:[#allocation7 + $0x78] sm:$0xff]  ;;  %v151_v5 = vld [vmem:[#allocation8] sm:$0xff] }
  0x55   :  { %v767_v61 = vpack.c.bf16 %v150_v60, %v149_v59  ;;  %v492_v62 = vld [vmem:[%s1121_s2] ss:$0 sm:$0xff]  ;;  %v152_v6 = vld [vmem:[#allocation8 + $0x8] sm:$0xff]  ;;  %v154_v9 = vld [vmem:[#allocation8 + $0x18] sm:$0xff] }
  0x56   :  { %718 = vmatpush3.bf16.msra.mxu0 %v715_v12  ;;  %v153_v7 = vld [vmem:[#allocation8 + $0x10] sm:$0xff]  ;;  %v803_v8 = vpack.c.bf16 %v152_v6, %v151_v5  ;;  %v155_v11 = vld [vmem:[#allocation8 + $0x20] sm:$0xff]  ;;  %v156_v12 = vld [vmem:[#allocation8 + $0x28] sm:$0xff] }
  0x57   :  { %720 = vmatprep.subr.bf16.mxu0 %v719_v15  ;;  %746 = vmatpush3.bf16.msra.mxu1 %v743_v33  ;;  %v807_v10 = vpack.c.bf16 %v154_v9, %v153_v7  ;;  %v811_v13 = vpack.c.bf16 %v156_v12, %v155_v11  ;;  %v157_v14 = vld [vmem:[#allocation8 + $0x30] sm:$0xff]  ;;  %v159_v17 = vld [vmem:[#allocation8 + $0x40] sm:$0xff]  ;;  %v164_v24 = vld [vmem:[#allocation8 + $0x68] sm:$0xff] }
  0x58   :  { %748 = vmatprep.subr.bf16.mxu1 %v747_v36  ;;  %v161_v20 = vld [vmem:[#allocation8 + $0x50] sm:$0xff]  ;;  %v163_v23 = vld [vmem:[#allocation8 + $0x60] sm:$0xff]  ;;  %v166_v32 = vld [vmem:[#allocation8 + $0x78] sm:$0xff] }
  0x59   :  { %v493_v26 = vld [vmem:[%s1123_s4] ss:$0 sm:$0xff] }
  0x5a   :  { %722 = vmatpush3.bf16.msra.mxu0 %v719_v15  ;;  %v158_v15 = vld [vmem:[#allocation8 + $0x38] sm:$0xff]  ;;  %v494_v40 = vld [vmem:[%s1125_s6] ss:$0 sm:$0xff] }
  0x5b   :  { %724 = vmatprep.subr.bf16.mxu0 %v723_v18  ;;  %750 = vmatpush3.bf16.msra.mxu1 %v747_v36  ;;  %v815_v16 = vpack.c.bf16 %v158_v15, %v157_v14 }
  0x5c   :  { %752 = vmatprep.subr.bf16.mxu1 %v751_v39 }
  0x5e   :  { %726 = vmatpush3.bf16.msra.mxu0 %v723_v18  ;;  %v160_v18 = vld [vmem:[#allocation8 + $0x48] sm:$0xff] }
  0x5f   :  { %728 = vmatprep.subr.bf16.mxu0 %v727_v21  ;;  %754 = vmatpush3.bf16.msra.mxu1 %v751_v39  ;;  %v819_v19 = vpack.c.bf16 %v160_v18, %v159_v17 }
  0x60   :  { %756 = vmatprep.subr.bf16.mxu1 %v755_v42 }
  0x62   :  { %730 = vmatpush3.bf16.msra.mxu0 %v727_v21  ;;  %v162_v21 = vld [vmem:[#allocation8 + $0x58] sm:$0xff] }
  0x63   :  { %732 = vmatprep.subr.bf16.mxu0 %v731_v25  ;;  %758 = vmatpush3.bf16.msra.mxu1 %v755_v42  ;;  %v823_v22 = vpack.c.bf16 %v162_v21, %v161_v20 }
  0x64   :  { %760 = vmatprep.subr.bf16.mxu1 %v759_v45 }
  0x66   :  { %734 = vmatpush3.bf16.msra.mxu0 %v731_v25  ;;  %v827_v25 = vpack.c.bf16 %v164_v24, %v163_v23 }
  0x67   :  { %736 = vmatprep.subr.bf16.mxu0 %v735_v27  ;;  %762 = vmatpush3.bf16.msra.mxu1 %v759_v45 }
  0x68   :  { %764 = vmatprep.subr.bf16.mxu1 %v763_v48 }
  0x6a   :  { %738 = vmatpush3.bf16.msra.mxu0 %v735_v27 }
  0x6b   :  { %772 = vmatprep.subr.bf16.mxu0 %v739_v31  ;;  %766 = vmatpush3.bf16.msra.mxu1 %v763_v48 }
  0x6c   :  { %768 = vmatprep.subr.bf16.mxu1 %v767_v61 }
  0x6f   :  { %770 = vmatpush3.bf16.msra.mxu1 %v767_v61 }
  0x70   :  { %804 = vmatprep.subr.bf16.mxu1 %v803_v8 }
  0xd9   :  { %v87_v49 = vpop.xlane.xlu0 %86 }
  0xda   :  { %v90_v50 = vmul.f32 0.03125, %v87_v49 }
  0xdc   :  { %v92_v51 = vadd.f32 1.1920929e-07, %v90_v50 }
  0xdd   :  { %v89_v52 = vpop.xlane.xlu0 %88 }
  0xde   :  { %842 = vrsqrt.f32 %v92_v51  ;;  %v91_v53 = vmul.f32 0.03125, %v89_v52 }
  0xe0   :  { %v93_v54 = vadd.f32 1.1920929e-07, %v91_v53 }
  0xe2   :  { %844 = vrsqrt.f32 %v93_v54 }
  0xe8   :  { %v843_v55 = vpop.eup %842 }
  0xe9   :  { %v96_v56 = vmul.f32 %v843_v55, %v1085_v0 }
  0xeb   :  { %599 = vmatprep.mubr.f32.mxu0 %v96_v56 }
  0xec   :  { %v845_v57 = vpop.eup %844 }
  0xed   :  { %v97_v58 = vmul.f32 %v845_v57, %v1087_v1 }
  0xef   :  { %600 = vmatmul.mubr.f32.vlgmr.msra.gmra.mrb[0].mxu0 %v97_v58 }
  0xf0   :  { %774 = vmatpush3.bf16.msra.mxu0 %v739_v31  ;;  %v165_v31 = vld [vmem:[#allocation8 + $0x70] sm:$0xff] }
  0xf1   :  { %776 = vmatprep.subr.bf16.mxu0 %v743_v33 }
  0xf4   :  { %778 = vmatpush3.bf16.msra.mxu0 %v743_v33  ;;  %v831_v33 = vpack.c.bf16 %v166_v32, %v165_v31 }
  0xf5   :  { %780 = vmatprep.subr.bf16.mxu0 %v747_v36 }
  0xf8   :  { %782 = vmatpush3.bf16.msra.mxu0 %v747_v36 }
  0xf9   :  { %784 = vmatprep.subr.bf16.mxu0 %v751_v39 }
  0xfc   :  { %786 = vmatpush3.bf16.msra.mxu0 %v751_v39 }
  0xfd   :  { %788 = vmatprep.subr.bf16.mxu0 %v755_v42 }
 0x100   :  { %790 = vmatpush3.bf16.msra.mxu0 %v755_v42 }
 0x101   :  { %792 = vmatprep.subr.bf16.mxu0 %v759_v45 }
 0x104   :  { %794 = vmatpush3.bf16.msra.mxu0 %v759_v45 }
 0x105   :  { %796 = vmatprep.subr.bf16.mxu0 %v763_v48 }
 0x108   :  { %798 = vmatpush3.bf16.msra.mxu0 %v763_v48 }
 0x109   :  { %800 = vmatprep.subr.bf16.mxu0 %v767_v61 }
 0x10c   :  { %802 = vmatpush3.bf16.msra.mxu0 %v767_v61 }
 0x1c2   :  { %v601_v63 = vpop.f32.mrb[0].mxu0 }
 0x1c3   :  { %v239_v0 = vadd.f32 %v601_v63, %v492_v62  ;;  %v233_v1 = vpop.f32.mrb[1].mxu0 }
 0x1c4   :  { %v234_v2 = vadd.f32 %v492_v62, %v233_v1 }
 0x1c5   :  { %v243_v4 = vmax.f32 %v239_v0, 0.0 }
 0x1c6   :  { %v242_v3 = vmax.f32 %v234_v2, 0.0 }
 0x1c8   :  { %634 = vmatprep.mubr.f32.mxu1 %v242_v3 }
 0x1c9   :  { %635 = vmatmul.mubr.f32.vlgmr.msra.gmra.mrb[0].mxu1 %v243_v4 }
 0x1ca   :  { %806 = vmatpush3.bf16.msra.mxu1 %v803_v8 }
 0x1cb   :  { %808 = vmatprep.subr.bf16.mxu1 %v807_v10 }
 0x1ce   :  { %810 = vmatpush3.bf16.msra.mxu1 %v807_v10 }
 0x1cf   :  { %812 = vmatprep.subr.bf16.mxu1 %v811_v13 }
 0x1d2   :  { %814 = vmatpush3.bf16.msra.mxu1 %v811_v13 }
 0x1d3   :  { %816 = vmatprep.subr.bf16.mxu1 %v815_v16 }
 0x1d6   :  { %818 = vmatpush3.bf16.msra.mxu1 %v815_v16 }
 0x1d7   :  { %820 = vmatprep.subr.bf16.mxu1 %v819_v19 }
 0x1da   :  { %822 = vmatpush3.bf16.msra.mxu1 %v819_v19 }
 0x1db   :  { %824 = vmatprep.subr.bf16.mxu1 %v823_v22 }
 0x1de   :  { %826 = vmatpush3.bf16.msra.mxu1 %v823_v22 }
 0x1df   :  { %828 = vmatprep.subr.bf16.mxu1 %v827_v25 }
 0x1e2   :  { %830 = vmatpush3.bf16.msra.mxu1 %v827_v25 }
 0x1e3   :  { %832 = vmatprep.subr.bf16.mxu1 %v831_v33 }
 0x1e6   :  { %834 = vmatpush3.bf16.msra.mxu1 %v831_v33 }
 0x29c   :  { %v636_v27 = vpop.f32.mrb[0].mxu1 }
 0x29d   :  { %v310_v28 = vpop.f32.mrb[1].mxu1  ;;  %v316_v30 = vadd.f32 %v636_v27, %v493_v26 }
 0x29e   :  { %v311_v29 = vadd.f32 %v493_v26, %v310_v28 }
 0x2a0   :  { %669 = vmatprep.mubr.f32.mxu0 %v311_v29 }
 0x2a1   :  { %670 = vmatmul.mubr.f32.vlgmr.msra.gmra.mrb[2].mxu0 %v316_v30 }
 0x374   :  { %v671_v34 = vpop.f32.mrb[2].mxu0 }
 0x375   :  { %v391_v35 = vadd.f32 %v671_v34, %v493_v26  ;;  %v385_v36 = vpop.f32.mrb[3].mxu0 }
 0x376   :  { %v386_v37 = vadd.f32 %v493_v26, %v385_v36 }
 0x377   :  { %v395_v39 = vmax.f32 %v391_v35, 0.0 }
 0x378   :  { %v394_v38 = vmax.f32 %v386_v37, 0.0 }
 0x37a   :  { %704 = vmatprep.mubr.f32.mxu1 %v394_v38 }
 0x37b   :  { %705 = vmatmul.mubr.f32.vlgmr.msra.gmra.mrb[2].mxu1 %v395_v39 }
 0x44e   :  { %v706_v41 = vpop.f32.mrb[2].mxu1 }
 0x44f   :  { %v468_v42 = vadd.f32 %v706_v41, %v494_v40  ;;  %v462_v43 = vpop.f32.mrb[3].mxu1 }
 0x450   :  { %v463_v44 = vadd.f32 %v494_v40, %v462_v43 }
 0x451   :  { %472 = vst [vmem:[#allocation10 + $0x8] sm:$0xff] %v468_v42 }
 0x452   :  { %471 = vst [vmem:[#allocation10] sm:$0xff] %v463_v44 }
 0x453   :  { %945 = shalt.err (!%p942_p8)
}
 0x454   :  { %s946_s6 = scalar_lea.hbm %s1126_s7, 256 }
 0x455   :  { %p947_p9 = scmp.ne.s32.totalorder %s1126_s7, %s946_s6  ;;  %p950_p10 = scmp.lt.u32.totalorder %s946_s6, %s1126_s7 }
 0x457   :  { %p952_p11 = pnand %p950_p10, %p947_p9 }
 0x459   :  { %955 = shalt.err (!%p952_p11)
}
 0x45a   :  { %484 = dma.vmem_to_hbm [thread:$0]  %s479_s8, 256, %s1126_s7, [#allocation4], %s966_s13, %s966_s13, %s967_s14  }
 0x45b   :  { %962 = dma.done.wait [#allocation4], 256  }
 0x45c   :  { %963 = vsyncadd [#allocation4], 4294967040 }
 0x45d   :  { %488 = vsyncpa [#allocation3], 1 }
 0x45e   :  { %489 = vsyncpa [#allocation6], 1 }
 0x45f   :  { %490 = vsyncpa [#allocation9], 1 }
 0x460   :  { %491 = vsyncpa [#allocation4], 1 }

</bundles_post_ra>
